<compile_context>
chip_gen: v7x
topology: tpu7x:2x2x1
jax: 0.10.0
libtpu: 0.0.40
codegen_flags: <defaults>
</compile_context>

<pallas_src>
import functools
import math

import jax
import jax.numpy as jnp
import numpy as np
from jax.experimental import pallas as pl
from jax.experimental.pallas import tpu as pltpu


# --------------------------------------------------------------------------------------
# Kernel 1: fused per-head QKV projection + RoPE.
#   grid = (B, nH, S_tiles); every step handles one (batch, head, seq-tile) slab.
#   The packed weight already contains [wq*s | wk | wv | (wq*s)@rot | wk@rot], so
#   RoPE is pure element-wise mul/add (no rotate, no roll, no extra matmul in-kernel).
# --------------------------------------------------------------------------------------
def _qkv_rope_kernel(h_ref, w_ref, b_ref, cos_ref, sin_ref,
                     q_ref, k_ref, v_ref, *, head_dim):
    hd = head_dim
    x = h_ref[0]                                     # (Ts, D)     bf16
    w = w_ref[0]                                     # (D, 5*hd)   bf16
    proj = jnp.dot(x, w, preferred_element_type=jnp.float32) + b_ref[0]   # (Ts, 5*hd) f32

    q = proj[:, 0 * hd:1 * hd]
    k = proj[:, 1 * hd:2 * hd]
    v = proj[:, 2 * hd:3 * hd]
    qr = proj[:, 3 * hd:4 * hd]                      # == rotate_half(q) (folded weights)
    kr = proj[:, 4 * hd:5 * hd]                      # == rotate_half(k)

    cos = cos_ref[...]                               # (Ts, hd) f32
    sin = sin_ref[...]

    q_ref[0, 0] = (q * cos + qr * sin).astype(jnp.bfloat16)
    k_ref[0, 0] = (k * cos + kr * sin).astype(jnp.bfloat16)
    v_ref[0, 0] = v.astype(jnp.bfloat16)


# --------------------------------------------------------------------------------------
# Kernel 2: flash-style attention + fused output projection.
#   grid = (B, q_tiles, nH, k_tiles).  Online softmax state (m, l, acc) lives in VMEM
#   scratch and is reset at ki == 0.  At the last k-tile, the normalized per-head
#   context is projected with the per-head (hd, D) slice of wo and ACCUMULATED into the
#   resident (1, Tq, D) output block (head + k-tile are reduction axes for the output).
# --------------------------------------------------------------------------------------
def _flash_attn_oproj_kernel(q_ref, k_ref, v_ref, wo_ref, bo_ref, out_ref,
                             m_ref, l_ref, acc_ref):
    hh = pl.program_id(2)
    ki = pl.program_id(3)

    @pl.when(jnp.logical_and(hh == 0, ki == 0))
    def _init_out():
        out_ref[...] = jnp.broadcast_to(bo_ref[...], out_ref.shape)

    @pl.when(ki == 0)
    def _init_softmax():
        m_ref[...] = jnp.full_like(m_ref, -jnp.inf)
        l_ref[...] = jnp.zeros_like(l_ref)
        acc_ref[...] = jnp.zeros_like(acc_ref)

    q = q_ref[0, 0]                                  # (Tq, hd) bf16, pre-scaled by 1/sqrt(hd)
    k = k_ref[0, 0]                                  # (Tk, hd) bf16
    v = v_ref[0, 0]                                  # (Tk, hd) bf16

    # scores = q @ k^T, contraction over head_dim, f32 accumulation on the MXU.
    s = jax.lax.dot_general(q, k, (((1,), (1,)), ((), ())),
                            preferred_element_type=jnp.float32)          # (Tq, Tk) f32

    m_prev = m_ref[...]
    m_new = jnp.maximum(m_prev, jnp.max(s, axis=-1, keepdims=True))
    alpha = jnp.exp(m_prev - m_new)
    p = jnp.exp(s - m_new)                                                # f32 softmax math
    l_ref[...] = alpha * l_ref[...] + jnp.sum(p, axis=-1, keepdims=True)
    acc_ref[...] = alpha * acc_ref[...] + jnp.dot(
        p.astype(jnp.bfloat16), v, preferred_element_type=jnp.float32)
    m_ref[...] = m_new

    @pl.when(ki == pl.num_programs(3) - 1)
    def _finalize():
        ctx = acc_ref[...] * pl.reciprocal(l_ref[...], approx=False)      # (Tq, hd) f32
        contrib = jnp.dot(ctx.astype(jnp.bfloat16), wo_ref[0],
                          preferred_element_type=jnp.float32)             # (Tq, D) f32
        out_ref[...] = out_ref[...] + contrib[None]


# --------------------------------------------------------------------------------------
# Wrapper
# --------------------------------------------------------------------------------------
def dao_attention_mha_rope(h, cos, sin, params, *, s_tile=None, q_tile=None, k_tile=None):
    """h: (B, S, D) f32; cos/sin: (S, head_dim) RoPE tables; params: weights/biases.

    Weights are stored as (in_features, out_features) == PyTorch weight.T, y = x @ W + b.
    """
    B, S, D = h.shape
    nH = params["num_heads"]
    hd = params["head_dim"]
    assert hd % 2 == 0, "RoPE requires an even head_dim"
    P = nH * hd

    def pick(pref, n, default=256):
        t = min(n, default if pref is None else pref)
        return t if n % t == 0 else n

    Ts = pick(s_tile, S)
    Tq = pick(q_tile, S)
    Tk = pick(k_tile, S)

    # ---- trace-time weight packing (all folding happens here, in f32) -------------
    scale = 1.0 / math.sqrt(hd)
    wq = params["wq"] * scale                        # fold 1/sqrt(hd) into q projection
    bq = params["bq"] * scale
    wk, bk = params["wk"], params["bk"]
    wv, bv = params["wv"], params["bv"]

    half = hd // 2
    eye = jnp.eye(half, dtype=jnp.float32)
    zero = jnp.zeros((half, half), dtype=jnp.float32)
    rot = jnp.concatenate(
        [jnp.concatenate([zero, eye], axis=1),
         jnp.concatenate([-eye, zero], axis=1)], axis=0)        # (hd, hd): x @ rot == rotate_half(x)

    def per_head_w(w):  # (D, P) -> (nH, D, hd)
        return jnp.transpose(w.reshape(D, nH, hd), (1, 0, 2))

    def per_head_b(b):  # (1, P) -> (nH, 1, hd)
        return jnp.transpose(b.reshape(1, nH, hd), (1, 0, 2))

    wq3, wk3, wv3 = per_head_w(wq), per_head_w(wk), per_head_w(wv)
    bq3, bk3, bv3 = per_head_b(bq), per_head_b(bk), per_head_b(bv)

    # Packed per-head projection: [q | k | v | rotate_half(q) | rotate_half(k)]
    w5 = jnp.concatenate([wq3, wk3, wv3, wq3 @ rot, wk3 @ rot], axis=-1).astype(jnp.bfloat16)
    b5 = jnp.concatenate([bq3, bk3, bv3, bq3 @ rot, bk3 @ rot], axis=-1)  # f32 (added post-acc)

    wo3 = params["wo"].reshape(nH, hd, D).astype(jnp.bfloat16)            # per-head (hd, D)
    bo = params["bo"]                                                     # (1, D) f32
    h_bf = h.astype(jnp.bfloat16)

    # ---- Kernel 1: per-head QKV + RoPE → q/k/v in (B, nH, S, hd) bf16 --------------
    qkv_shape = jax.ShapeDtypeStruct((B, nH, S, hd), jnp.bfloat16)
    q, k, v = pl.pallas_call(
        functools.partial(_qkv_rope_kernel, head_dim=hd),
        out_shape=(qkv_shape, qkv_shape, qkv_shape),
        grid=(B, nH, S // Ts),
        in_specs=[
            pl.BlockSpec((1, Ts, D), lambda b, hh, s: (b, s, 0)),         # h tile
            pl.BlockSpec((1, D, 5 * hd), lambda b, hh, s: (hh, 0, 0)),    # per-head packed W
            pl.BlockSpec((1, 1, 5 * hd), lambda b, hh, s: (hh, 0, 0)),    # per-head packed bias
            pl.BlockSpec((Ts, hd), lambda b, hh, s: (s, 0)),              # cos tile
            pl.BlockSpec((Ts, hd), lambda b, hh, s: (s, 0)),              # sin tile
        ],
        out_specs=[
            pl.BlockSpec((1, 1, Ts, hd), lambda b, hh, s: (b, hh, s, 0)),
            pl.BlockSpec((1, 1, Ts, hd), lambda b, hh, s: (b, hh, s, 0)),
            pl.BlockSpec((1, 1, Ts, hd), lambda b, hh, s: (b, hh, s, 0)),
        ],
        compiler_params=pltpu.CompilerParams(
            dimension_semantics=("parallel", "parallel", "parallel")),
    )(h_bf, w5, b5, cos, sin)

    # ---- Kernel 2: flash attention + fused output projection → (B, S, D) f32 -------
    out = pl.pallas_call(
        _flash_attn_oproj_kernel,
        out_shape=jax.ShapeDtypeStruct((B, S, D), jnp.float32),
        grid=(B, S // Tq, nH, S // Tk),
        in_specs=[
            pl.BlockSpec((1, 1, Tq, hd), lambda b, qi, hh, ki: (b, hh, qi, 0)),  # q tile
            pl.BlockSpec((1, 1, Tk, hd), lambda b, qi, hh, ki: (b, hh, ki, 0)),  # k tile
            pl.BlockSpec((1, 1, Tk, hd), lambda b, qi, hh, ki: (b, hh, ki, 0)),  # v tile
            pl.BlockSpec((1, hd, D), lambda b, qi, hh, ki: (hh, 0, 0)),          # per-head wo
            pl.BlockSpec((1, D), lambda b, qi, hh, ki: (0, 0)),                  # bo
        ],
        out_specs=pl.BlockSpec((1, Tq, D), lambda b, qi, hh, ki: (b, qi, 0)),
        scratch_shapes=[
            pltpu.VMEM((Tq, 1), jnp.float32),    # running max
            pltpu.VMEM((Tq, 1), jnp.float32),    # running denom
            pltpu.VMEM((Tq, hd), jnp.float32),   # running context accumulator
        ],
        compiler_params=pltpu.CompilerParams(
            dimension_semantics=("parallel", "parallel", "arbitrary", "arbitrary")),
    )(q, k, v, wo3, bo)
    return out


# --------------------------------------------------------------------------------------
# Pure-JAX reference (mirror of DaoMHA.forward, mask=None, rope, no cache)
# --------------------------------------------------------------------------------------
def _reference(h, cos, sin, params):
    B, S, D = h.shape
    nH, hd = params["num_heads"], params["head_dim"]

    def lin(x, w, b):
        return x @ w + b

    q = lin(h, params["wq"], params["bq"]).reshape(B, S, nH, hd).transpose(0, 2, 1, 3)
    k = lin(h, params["wk"], params["bk"]).reshape(B, S, nH, hd).transpose(0, 2, 1, 3)
    v = lin(h, params["wv"], params["bv"]).reshape(B, S, nH, hd).transpose(0, 2, 1, 3)

    def rotate_half(x):
        x1, x2 = x[..., : hd // 2], x[..., hd // 2:]
        return jnp.concatenate([-x2, x1], axis=-1)

    q = q * cos + rotate_half(q) * sin
    k = k * cos + rotate_half(k) * sin

    w = jnp.einsum("bhqd,bhkd->bhqk", q, k) / math.sqrt(hd)
    p = jax.nn.softmax(w, axis=-1)
    o = jnp.einsum("bhqk,bhkd->bhqd", p, v)
    o = o.transpose(0, 2, 1, 3).reshape(B, S, nH * hd)
    return o @ params["wo"] + params["bo"]


if __name__ == "__main__":
    # Small shapes consistent with the module; tiles chosen so both the s/q/k tiling
    # and the head/k-tile accumulation paths are exercised (2 tiles per axis).
    B, S, D = 2, 16, 32
    num_heads, head_dim = 4, 8
    P = num_heads * head_dim

    key = jax.random.PRNGKey(0)
    keys = jax.random.split(key, 10)

    def linear_init(kw, kb, fan_in, fan_out):
        bound = 1.0 / math.sqrt(fan_in)
        w = jax.random.uniform(kw, (fan_in, fan_out), jnp.float32, -bound, bound)
        b = jax.random.uniform(kb, (1, fan_out), jnp.float32, -bound, bound)
        return w, b

    wq, bq = linear_init(keys[0], keys[1], D, P)
    wk, bk = linear_init(keys[2], keys[3], D, P)
    wv, bv = linear_init(keys[4], keys[5], D, P)
    wo, bo = linear_init(keys[6], keys[7], P, D)

    params = dict(num_heads=num_heads, head_dim=head_dim,
                  wq=wq, bq=bq, wk=wk, bk=bk, wv=wv, bv=bv, wo=wo, bo=bo)

    # RoPE tables: (seq_len, head_dim)
    inv_freq = 1.0 / (10000.0 ** (jnp.arange(0, head_dim, 2, dtype=jnp.float32) / head_dim))
    pos = jnp.arange(S, dtype=jnp.float32)
    freqs = jnp.outer(pos, inv_freq)                       # (S, hd/2)
    emb = jnp.concatenate([freqs, freqs], axis=-1)         # (S, hd)
    cos, sin = jnp.cos(emb), jnp.sin(emb)

    h = jax.random.normal(keys[8], (B, S, D), dtype=jnp.float32)

    out = dao_attention_mha_rope(h, cos, sin, params, s_tile=8, q_tile=8, k_tile=8)
    out = jax.block_until_ready(out)

    ref = _reference(h, cos, sin, params)
    # Tolerance reflects bf16 MXU operands (q/k/v, probs, ctx, weights); accumulation
    # and all softmax math are f32.
    np.testing.assert_allclose(np.asarray(out), np.asarray(ref), rtol=2e-2, atol=2e-2)

    print("KERNEL_OK")
</pallas_src>

<mosaic_0001>
module attributes {stable_mosaic.version = 11 : i64} {
  func.func @_qkv_rope_kernel(%arg0: i32, %arg1: i32, %arg2: i32, %arg3: memref<1x8x32xbf16, #tpu.memory_space<vmem>>, %arg4: memref<1x32x40xbf16, #tpu.memory_space<vmem>>, %arg5: memref<1x1x40xf32, #tpu.memory_space<vmem>>, %arg6: memref<8x8xf32, #tpu.memory_space<vmem>>, %arg7: memref<8x8xf32, #tpu.memory_space<vmem>>, %arg8: memref<1x1x8x8xbf16, #tpu.memory_space<vmem>>, %arg9: memref<1x1x8x8xbf16, #tpu.memory_space<vmem>>, %arg10: memref<1x1x8x8xbf16, #tpu.memory_space<vmem>>) attributes {dimension_semantics = [#tpu.dimension_semantics<parallel>, #tpu.dimension_semantics<parallel>, #tpu.dimension_semantics<parallel>], iteration_bounds = array<i64: 2, 4, 2>, scalar_prefetch = 0 : i64, scratch_operands = 0 : i64, tpu.core_type = #tpu.core_type<tc>, window_params = [{transform_indices = @transform_0, window_bounds = array<i64: 1, 8, 32>}, {transform_indices = @transform_1, window_bounds = array<i64: 1, 32, 40>}, {transform_indices = @transform_2, window_bounds = array<i64: 1, 1, 40>}, {transform_indices = @transform_3, window_bounds = array<i64: 8, 8>}, {transform_indices = @transform_4, window_bounds = array<i64: 8, 8>}, {transform_indices = @transform_5, window_bounds = array<i64: 1, 1, 8, 8>}, {transform_indices = @transform_6, window_bounds = array<i64: 1, 1, 8, 8>}, {transform_indices = @transform_7, window_bounds = array<i64: 1, 1, 8, 8>}]} {
    %c0 = arith.constant 0 : index
    %c0_0 = arith.constant 0 : index
    %c0_1 = arith.constant 0 : index
    %0 = vector.load %arg3[%c0, %c0_0, %c0_1] : memref<1x8x32xbf16, #tpu.memory_space<vmem>>, vector<1x8x32xbf16>
    %1 = vector.shape_cast %0 : vector<1x8x32xbf16> to vector<8x32xbf16>
    %c0_2 = arith.constant 0 : index
    %c0_3 = arith.constant 0 : index
    %c0_4 = arith.constant 0 : index
    %2 = vector.load %arg4[%c0_2, %c0_3, %c0_4] : memref<1x32x40xbf16, #tpu.memory_space<vmem>>, vector<1x32x40xbf16>
    %3 = vector.shape_cast %2 : vector<1x32x40xbf16> to vector<32x40xbf16>
    %cst = arith.constant dense<0.000000e+00> : vector<8x40xf32>
    %4 = tpu.matmul %1, %3, %cst {dimension_numbers = #tpu.dot_dimension_numbers<[1], [0], [0], [1], [0, 0, 1, 1], [], []>} : vector<8x32xbf16>, vector<32x40xbf16>, vector<8x40xf32> -> vector<8x40xf32>
    %c0_5 = arith.constant 0 : index
    %c0_6 = arith.constant 0 : index
    %c0_7 = arith.constant 0 : index
    %5 = vector.load %arg5[%c0_5, %c0_6, %c0_7] : memref<1x1x40xf32, #tpu.memory_space<vmem>>, vector<1x1x40xf32>
    %6 = vector.shape_cast %5 : vector<1x1x40xf32> to vector<1x40xf32>
    %7 = vector.broadcast %6 : vector<1x40xf32> to vector<8x40xf32>
    %8 = arith.addf %4, %7 : vector<8x40xf32>
    %9 = vector.extract_strided_slice %8 {offsets = [0, 0], sizes = [8, 8], strides = [1, 1]} : vector<8x40xf32> to vector<8x8xf32>
    %10 = vector.extract_strided_slice %8 {offsets = [0, 8], sizes = [8, 8], strides = [1, 1]} : vector<8x40xf32> to vector<8x8xf32>
    %11 = vector.extract_strided_slice %8 {offsets = [0, 16], sizes = [8, 8], strides = [1, 1]} : vector<8x40xf32> to vector<8x8xf32>
    %12 = vector.extract_strided_slice %8 {offsets = [0, 24], sizes = [8, 8], strides = [1, 1]} : vector<8x40xf32> to vector<8x8xf32>
    %13 = vector.extract_strided_slice %8 {offsets = [0, 32], sizes = [8, 8], strides = [1, 1]} : vector<8x40xf32> to vector<8x8xf32>
    %c0_8 = arith.constant 0 : index
    %c0_9 = arith.constant 0 : index
    %14 = vector.load %arg6[%c0_8, %c0_9] : memref<8x8xf32, #tpu.memory_space<vmem>>, vector<8x8xf32>
    %c0_10 = arith.constant 0 : index
    %c0_11 = arith.constant 0 : index
    %15 = vector.load %arg7[%c0_10, %c0_11] : memref<8x8xf32, #tpu.memory_space<vmem>>, vector<8x8xf32>
    %16 = arith.mulf %9, %14 : vector<8x8xf32>
    %17 = arith.mulf %12, %15 : vector<8x8xf32>
    %18 = arith.addf %16, %17 : vector<8x8xf32>
    %19 = arith.truncf %18 : vector<8x8xf32> to vector<8x8xbf16>
    %c0_12 = arith.constant 0 : index
    %c0_13 = arith.constant 0 : index
    %c0_14 = arith.constant 0 : index
    %c0_15 = arith.constant 0 : index
    %20 = vector.load %arg8[%c0_12, %c0_13, %c0_14, %c0_15] : memref<1x1x8x8xbf16, #tpu.memory_space<vmem>>, vector<1x1x8x8xbf16>
    %21 = vector.shape_cast %20 : vector<1x1x8x8xbf16> to vector<8x8xbf16>
    %22 = vector.shape_cast %19 : vector<8x8xbf16> to vector<1x1x8x8xbf16>
    tpu.vector_store %arg8[%c0_12, %c0_13, %c0_14, %c0_15], %22 {strides = array<i32>} : memref<1x1x8x8xbf16, #tpu.memory_space<vmem>>, vector<1x1x8x8xbf16>,
    %23 = arith.mulf %10, %14 : vector<8x8xf32>
    %24 = arith.mulf %13, %15 : vector<8x8xf32>
    %25 = arith.addf %23, %24 : vector<8x8xf32>
    %26 = arith.truncf %25 : vector<8x8xf32> to vector<8x8xbf16>
    %c0_16 = arith.constant 0 : index
    %c0_17 = arith.constant 0 : index
    %c0_18 = arith.constant 0 : index
    %c0_19 = arith.constant 0 : index
    %27 = vector.load %arg9[%c0_16, %c0_17, %c0_18, %c0_19] : memref<1x1x8x8xbf16, #tpu.memory_space<vmem>>, vector<1x1x8x8xbf16>
    %28 = vector.shape_cast %27 : vector<1x1x8x8xbf16> to vector<8x8xbf16>
    %29 = vector.shape_cast %26 : vector<8x8xbf16> to vector<1x1x8x8xbf16>
    tpu.vector_store %arg9[%c0_16, %c0_17, %c0_18, %c0_19], %29 {strides = array<i32>} : memref<1x1x8x8xbf16, #tpu.memory_space<vmem>>, vector<1x1x8x8xbf16>,
    %30 = arith.truncf %11 : vector<8x8xf32> to vector<8x8xbf16>
    %c0_20 = arith.constant 0 : index
    %c0_21 = arith.constant 0 : index
    %c0_22 = arith.constant 0 : index
    %c0_23 = arith.constant 0 : index
    %31 = vector.load %arg10[%c0_20, %c0_21, %c0_22, %c0_23] : memref<1x1x8x8xbf16, #tpu.memory_space<vmem>>, vector<1x1x8x8xbf16>
    %32 = vector.shape_cast %31 : vector<1x1x8x8xbf16> to vector<8x8xbf16>
    %33 = vector.shape_cast %30 : vector<8x8xbf16> to vector<1x1x8x8xbf16>
    tpu.vector_store %arg10[%c0_20, %c0_21, %c0_22, %c0_23], %33 {strides = array<i32>} : memref<1x1x8x8xbf16, #tpu.memory_space<vmem>>, vector<1x1x8x8xbf16>,
    return
  }
  func.func @transform_0(%arg0: i32, %arg1: i32, %arg2: i32) -> (i32, i32, i32) {
    %c0_i32 = arith.constant 0 : i32
    %c0_i32_0 = arith.constant 0 : i32
    return %arg0, %arg2, %c0_i32 : i32, i32, i32
  }
  func.func @transform_1(%arg0: i32, %arg1: i32, %arg2: i32) -> (i32, i32, i32) {
    %c0_i32 = arith.constant 0 : i32
    %c0_i32_0 = arith.constant 0 : i32
    %c0_i32_1 = arith.constant 0 : i32
    return %arg1, %c0_i32, %c0_i32_0 : i32, i32, i32
  }
  func.func @transform_2(%arg0: i32, %arg1: i32, %arg2: i32) -> (i32, i32, i32) {
    %c0_i32 = arith.constant 0 : i32
    %c0_i32_0 = arith.constant 0 : i32
    %c0_i32_1 = arith.constant 0 : i32
    return %arg1, %c0_i32, %c0_i32_0 : i32, i32, i32
  }
  func.func @transform_3(%arg0: i32, %arg1: i32, %arg2: i32) -> (i32, i32) {
    %c0_i32 = arith.constant 0 : i32
    %c0_i32_0 = arith.constant 0 : i32
    return %arg2, %c0_i32 : i32, i32
  }
  func.func @transform_4(%arg0: i32, %arg1: i32, %arg2: i32) -> (i32, i32) {
    %c0_i32 = arith.constant 0 : i32
    %c0_i32_0 = arith.constant 0 : i32
    return %arg2, %c0_i32 : i32, i32
  }
  func.func @transform_5(%arg0: i32, %arg1: i32, %arg2: i32) -> (i32, i32, i32, i32) {
    %c0_i32 = arith.constant 0 : i32
    %c0_i32_0 = arith.constant 0 : i32
    return %arg0, %arg1, %arg2, %c0_i32 : i32, i32, i32, i32
  }
  func.func @transform_6(%arg0: i32, %arg1: i32, %arg2: i32) -> (i32, i32, i32, i32) {
    %c0_i32 = arith.constant 0 : i32
    %c0_i32_0 = arith.constant 0 : i32
    return %arg0, %arg1, %arg2, %c0_i32 : i32, i32, i32, i32
  }
  func.func @transform_7(%arg0: i32, %arg1: i32, %arg2: i32) -> (i32, i32, i32, i32) {
    %c0_i32 = arith.constant 0 : i32
    %c0_i32_0 = arith.constant 0 : i32
    return %arg0, %arg1, %arg2, %c0_i32 : i32, i32, i32, i32
  }
}

</mosaic_0001>

<bundles_post_ra>
// kernel: tpu_custom_call.1
= control target key start
LH: loop header
LB: loop body
LE: loop exit
PB: predicated region body
PF: predicated region fallthrough
CT: control target
= control target key end

     0   :  { %s1380_s0 = inlined_call_operand.vmem [shape: bf16[2,16,32], index: 0, kind: input, shape index: {}]   ;;  %s1381_s1 = inlined_call_operand.hbm [shape: bf16[4,32,40], index: 1, kind: input, shape index: {}]   ;;  %s1382_s2 = inlined_call_operand.vmem [shape: f32[4,1,40], index: 2, kind: input, shape index: {}]   ;;  %s1383_s3 = inlined_call_operand.vmem [shape: f32[16,8], index: 3, kind: input, shape index: {}]   ;;  %s1384_s4 = inlined_call_operand.vmem [shape: f32[16,8], index: 4, kind: input, shape index: {}]   ;;  %s1385_s5 = inlined_call_operand.vmem [shape: bf16[2,4,16,8], index: 5, kind: output, shape index: {0}]   ;;  %s1386_s6 = inlined_call_operand.vmem [shape: bf16[2,4,16,8], index: 6, kind: output, shape index: {1}]   ;;  %s1387_s7 = inlined_call_operand.vmem [shape: bf16[2,4,16,8], index: 7, kind: output, shape index: {2}]  }
   0x1   :  { %1389 = sst [smem:[#allocation8_spill]] %s1381_s1 }
   0x2   :  { %13 = vsyncpa [#allocation3], 0 }
   0x3   :  { %15 = vsyncpa [#allocation3 + $0x1], 0  ;;  %s1190_s24 = smov 0   ;;  %s1192_s25 = smov 0  }
   0x4   :  { %s1194_s26 = smov 0   ;;  %s1196_s27 = smov 0  }
   0x5   :  { %s1198_s28 = smov 0   ;;  %s1200_s29 = smov 0  }
   0x6   :  { %s1202_s30 = smov 0   ;;  %s1204_s8 = smov 0  }
   0x7   :  { %s1206_s9 = smov 0   ;;  %s1208_s10 = smov 0  }
   0x8 LB: > { %s882_s11 = sadd.s32 4294967295, %s1137_s10   ;;  %s33_s12 = sadd.s32 1, %s1125_s30  ;;  %s1137_s10 = sphi %s1208_s10, %s21_s10   ;;  %s1133_s9 = sphi %s1206_s9, %s1408_s9   ;;  %s1129_s8 = sphi %s1204_s8, %s1407_s8   ;;  %s1125_s30 = sphi %s1202_s30, %s1406_s30   ;;  %s1121_s29 = sphi %s1200_s29, %s1405_s29   ;;  %s1117_s28 = sphi %s1198_s28, %s1404_s28   ;;  %s1113_s27 = sphi %s1196_s27, %s1403_s27   ;;  %s1109_s26 = sphi %s1194_s26, %s1402_s26   ;;  %s1105_s25 = sphi %s1192_s25, %s1401_s25   ;;  %s1101_s24 = sphi %s1190_s24, %s1400_s24  }
   0x9   : > { %p34_p0 = scmp.ge.s32.totalorder %s33_s12, 2  ;;  %s36_s13 = sadd.s32 1, %s1129_s8 }
   0xa   : > { %s40_s14 = sadd.s32 1, %s1133_s9  ;;  %s75_s15 = sadd.s32 1, %s1109_s26 }
   0xb   : > { %s1410_s12 = smov (%p34_p0, %s33_s12), 0  ;;  %s1412_s13 = smov (!%p34_p0, %s36_s13), %s1129_s8 }
   0xc   : > { %1390 = sst [smem:[#allocation5_spill]] %s1410_s12  ;;  %p82_p1 = scmp.ne.s32.totalorder %s1109_s26, %s1105_s25 }
   0xd   : > { %p83_p2 = scmp.eq.s32.totalorder %s1137_s10, 0  ;;  %p38_p3 = scmp.ge.s32.totalorder %s1412_s13, 4 }
   0xe   : > { %p88_p4 = scmp.ne.s32.totalorder %s1105_s25, %s1101_s24  ;;  %p89_p6 = scmp.eq.s32.totalorder %s882_s11, 0 }
   0xf   : > { %p1250_p5 = por %p83_p2, %p82_p1  ;;  %s1414_s13 = smov (%p38_p3, %s1412_s13), 0 }
  0x10   : > { %1392 = sst [smem:[#allocation6_spill]] %s1414_s13  ;;  %s1416_s14 = smov (!%p38_p3, %s40_s14), %s1133_s9 }
  0x11   : > { %s72_s17 = ssub.s32 %s1129_s8, %s1414_s13  ;;  %p1259_p7 = por %p89_p6, %p88_p4 }
  0x12   : > { %p42_p8 = scmp.ge.s32.totalorder %s1416_s14, 2  ;;  %p73_p9 = scmp.eq.s32.totalorder %s72_s17, 0 }
  0x13   : > { %p932_p10 = scmp.lt.s32.totalorder %s1137_s10, 16  ;;  %s291_s20 = sand.u32 1, %s1109_s26  }
  0x14   : > { %s1418_s14 = smov (%p42_p8, %s1416_s14), 0  ;;  %s912_s21 = sshll.u32 %s1129_s8, 8 }
  0x15   : > { %1394 = sst [smem:[#allocation7_spill]] %s1418_s14  ;;  %s886_s22 = sshll.u32 %s291_s20, 4 }
  0x16   : > { %s1267_s19 = scalar_select %p73_p9, %s1109_s26, %s75_s15  }
  0x17   : > { %s1395_s1 = sld [smem:[#allocation8_spill]]  ;;  %s295_s13 = scalar_lea.vmem [#allocation2], %s886_s22 }
  0x18   : > { %s302_s12 = sshll.u32 %s295_s13, 4  ;;  %p1278_p11 = pnand %p932_p10, %p1250_p5  ;;  %s1282_s12 = int_to_ptr.vmem [resolvable:$true] %s302_s12 }
  0x19   : > { %s1284_s15 = scalar_lea.sflag [#allocation3], %s291_s20 }
  0x1a   : > { %p1027_p13 = pneg %p1278_p11 }
  0x1d   : > { %s1274_s11 = scalar_lea.hbm %s1395_s1, %s912_s21  ;;  %s1030_s21 = scalar_lea.hbm %s1395_s1, 1024 }
  0x1e   : > { %s1025_s23 = scalar_lea.hbm %s1274_s11, 256  ;;  %p1031_p2 = scmp.lt.u32.totalorder %s1274_s11, %s1395_s1 }
  0x1f   : > { %p1026_p12 = scmp.ne.s32.totalorder %s1274_s11, %s1025_s23  ;;  %p1032_p3 = scmp.lt.u32.totalorder %s1030_s21, %s1025_s23 }
  0x20   : > { %p1034_p5 = scmp.lt.u32.totalorder %s1025_s23, %s1274_s11 }
  0x21   : > { %p1028_p0 = pnand %p1027_p13, %p1026_p12  ;;  %p1033_p4 = por %p1032_p3, %p1031_p2 }
  0x23   : > { %p1029_p1 = pneg %p1028_p0  ;;  %p1035_p6 = por %p1034_p5, %p1033_p4 }
  0x25   : > { %p1036_p8 = pnand %p1035_p6, %p1029_p1 }
  0x27   : > { %1039 = shalt.err (!%p1036_p8)
}
  0x28   : > { %s1040_s20 = scalar_lea.vmem %s1282_s12, 256  ;;  %s1139_s13 = smov [#allocation2]  }
  0x29   : > { %p1041_p9 = scmp.ne.s32.totalorder %s1282_s12, %s1040_s20  ;;  %s1045_s16 = sshll.u32 %s1139_s13, 4  ;;  %s1046_s16 = int_to_ptr.vmem [resolvable:$false] %s1045_s16 }
  0x2a   : > { %s1047_s22 = scalar_lea.vmem %s1046_s16, 512  ;;  %p1048_p0 = scmp.lt.s32.totalorder %s1282_s12, %s1046_s16 }
  0x2b   : > { %p1043_p10 = pnand %p1041_p9, %p1027_p13  ;;  %p1049_p2 = scmp.lt.s32.totalorder %s1047_s22, %s1040_s20 }
  0x2d   : > { %p1044_p12 = pneg %p1043_p10  ;;  %p1050_p3 = por %p1049_p2, %p1048_p0 }
  0x2f   : > { %p1051_p4 = pnand %p1050_p3, %p1044_p12 }
  0x31   : > { %1054 = shalt.err (!%p1051_p4)
}
  0x32   : > { %s1140_s23 = smov 64   ;;  %s1141_s21 = smov 4  }
  0x33   : > { %931 = dma.hbm_to_vmem [thread:$0]  (!%p1278_p11), %s1274_s11, 256, %s1282_s12, %s1284_s15, %s1140_s23, %s1140_s23, %s1141_s21  }
  0x34   : > { %p889_p13 = scmp.ge.s32.totalorder %s1137_s10, 1  ;;  %p330_p1 = scmp.lt.s32.totalorder %s1137_s10, 17 }
  0x36   : > { %p331_p5 = pnand %p889_p13, %p330_p1 }
  0x37   : > { %s336_s24 = sand.u32 (!%p331_p5), 1, %s1105_s25  }
  0x38   : > { %334 = sbr.rel (%p331_p5) target bundleno = 524 (0x20c), region = 40  ;;  %s890_s20 = sshll.u32 (!%p331_p5), %s336_s24, 4 }
  0x39   : > { %s337_s13 = scalar_lea.sflag (!%p331_p5), [#allocation3], %s336_s24  ;;  %s340_s16 = scalar_lea.vmem (!%p331_p5), [#allocation2], %s890_s20 }
  0x3f   : > { %1096 = dma.done.wait (%p1259_p7), %s337_s13, 256  }
  0x40   : > { %1098 = vsyncadd (%p1259_p7), %s337_s13, 4294967040  ;;  %p421_p11 = scmp.lt.s32.totalorder %s1121_s29, 1  ;;  %p423_p6 = scmp.lt.s32.totalorder %s1113_s27, 1  ;;  %v1142_v0 = vmov 0.0   ;;  %vm1143_vm0 = vmmov 0   ;;  %v1023_v1 = vld [vmem:[%s340_s16] sm:$0xff]  }
  0x41   : > { %918 = vmatprep.subr.bf16.mxu0 %v1142_v0  ;;  %922 = vmatprep.mubr.msk.bf16.mxu0 %vm1143_vm0, %v1142_v0  ;;  %p429_p7 = scmp.lt.s32.totalorder %s1117_s28, 3  ;;  %v1024_v2 = vld [vmem:[%s340_s16 + $0x8] sm:$0xff]   ;;  %vm501_vm1 = vcmask 261120   ;;  %s1146_s21 = smov 24   ;;  %vm559_vm2 = vcmask 60416  }
  0x42   : > { %s1420_s29 = smov (!%p421_p11, %s1121_s29), 1  ;;  %s1422_s27 = smov (!%p423_p6, %s1113_s27), 1  ;;  %919 = vmatpush3.bf16.msra.mxu0 %v1023_v1 }
  0x43   : > { %s891_s12 = sshll.u32 %s1420_s29, 1  ;;  %s893_s18 = sshll.u32 %s1422_s27, 3  ;;  %920 = vmatprep.subr.bf16.mxu0 %v1142_v0 }
  0x44   : > { %s426_s11 = sadd.s32 %s891_s12, %s1422_s27  ;;  %s439_s23 = scalar_lea.vmem %s1384_s4, %s893_s18 }
  0x45   : > { %s892_s17 = sshll.u32 %s426_s11, 2  ;;  %s435_s20 = scalar_lea.vmem %s1383_s3, %s893_s18  ;;  %v546_v3 = vld [vmem:[%s439_s23] sm:$0xff] }
  0x46   : > { %s428_s14 = scalar_lea.vmem %s1380_s0, %s892_s17  ;;  %v545_v4 = vld [vmem:[%s435_s20] sm:$0xff]  ;;  %s1144_s12 = smov 32   ;;  %921 = vmatpush3.bf16.msra.mxu0 %v1024_v2 }
  0x47   : > { %566 = vrot.lane.b32.xlu0 %v546_v3, %s1144_s12  ;;  %s1424_s28 = smov (!%p429_p7, %s1117_s28), 3  ;;  %s1145_s11 = smov 8   ;;  %v477_v5 = vld [vmem:[%s428_s14] sm:$0xf] }
  0x48   : > { %562 = vrot.lane.b32.xlu1 %v545_v4, %s1145_s11  ;;  %s896_s15 = sshll.u32 %s1420_s29, 3  ;;  %s895_s22 = sshll.u32 %s1424_s28, 1 }
  0x49   : > { %s447_s18 = sadd.s32 %s895_s22, %s1422_s27  ;;  %923 = vmatmul.mubr.msk.bf16.vlgmr.msra.gmra.mrb[0].mxu0 %vm501_vm1, %v477_v5  ;;  %s431_s23 = scalar_lea.vmem %s1382_s2, %s1424_s28 }
  0x4a   : > { %s449_s16 = sadd.s32 %s896_s15, %s447_s18  ;;  %v904_v7 = vld [vmem:[%s431_s23] ss:$0 sm:$0xff]  ;;  %s1147_s29 = smov 104  }
  0x4b   : > { %549 = vrot.lane.b32.xlu0 %v546_v3, %s1146_s21  ;;  %s1148_s27 = smov 112   ;;  %s897_s14 = sshll.u32 %s449_s16, 2 }
  0x4c   : > { %s451_s20 = scalar_lea.vmem %s1385_s5, %s897_s14  ;;  %s475_s11 = scalar_lea.vmem %s1387_s7, %s897_s14 }
  0x4d   : > { %s1149_s15 = smov 120   ;;  %s463_s21 = scalar_lea.vmem %s1386_s6, %s897_s14 }
  0xb9   : > { %v567_v6 = vpop.permute.xlu0 %566 }
  0xba   : > { %v563_v17 = vpop.permute.xlu1 %562 }
  0xbd   : > { %v550_v9 = vpop.permute.xlu0 %549 }
 0x11c   : > { %v539_v8 = vpop.f32.mrb[0].mxu0 }
 0x11d   : > { %v540_v10 = vadd.f32 %v904_v7, %v539_v8  ;;  %v924_v11 = vpop.f32.mrb[1].mxu0 }
 0x11e   : > { %v542_v12 = vpop.f32.mrb[2].mxu0 }
 0x11f   : > { %v552_v13 = vmul.f32 %v550_v9, %v540_v10  ;;  %v925_v14 = vpop.f32.mrb[3].mxu0  ;;  %v569_v15 = vmul.f32 %v567_v6, %v540_v10  ;;  %v914_v16 = vpack.c.bf16 %v540_v10, %v540_v10  ;;  %v565_v18 = vmul.f32 %v563_v17, %v540_v10 }
 0x120   : > { %v547_v19 = vmul.f32 %v545_v4, %v540_v10 }
 0x121   : > { %571 = vrot.lane.b32.xlu1 %v569_v15, %s1147_s29  ;;  %554 = vrot.lane.b32.xlu0 %v552_v13, %s1147_s29 }
 0x125   : > { %587 = vrot.lane.b32.xlu0 %v914_v16, %s1148_s27 }
 0x193   : > { %v572_v20 = vpop.permute.xlu1 %571  ;;  %v555_v21 = vpop.permute.xlu0 %554 }
 0x194   : > { %v574_v22 = vadd.f32 %v572_v20, %v565_v18  ;;  %v557_v23 = vadd.f32 %v555_v21, %v547_v19 }
 0x196   : > { %v913_v24 = vpack.c.bf16 %v574_v22, %v574_v22  ;;  %v558_v25 = vpack.c.bf16 %v557_v23, %v557_v23 }
 0x197   : > { %v588_v26 = vpop.permute.xlu0 %587 }
 0x198   : > { %560 = vst.msk [vmem:[%s451_s20] sm:$0xf] %vm559_vm2, %v558_v25  ;;  %590 = vst.msk [vmem:[%s475_s11] sm:$0xf] %vm559_vm2, %v588_v26  ;;  %579 = vrot.lane.b32.xlu1 %v913_v24, %s1149_s15 }
 0x20a   : > { %v580_v27 = vpop.permute.xlu1 %579 }
 0x20b   : > { %582 = vst.msk [vmem:[%s463_s21] sm:$0xf] %vm559_vm2, %v580_v27 }
 0x20c PF: > { %s21_s10 = sadd.s32 1, %s1137_s10   ;;  %s1397_s16 = sld [smem:[#allocation5_spill]] }
 0x20d   : > { %p18_p8 = scmp.ge.s32.totalorder %s21_s10, 18   ;;  %s1398_s1 = sld [smem:[#allocation6_spill]] }
 0x20e   : > { %s1399_s17 = sld [smem:[#allocation7_spill]]  ;;  %s1400_s24 = smov %s1105_s25 }
 0x20f   : > { %s1401_s25 = smov %s1109_s26  ;;  %s1402_s26 = smov %s1267_s19 }
 0x210   : > { %s1403_s27 = smov %s1125_s30  ;;  %s1404_s28 = smov %s1129_s8 }
 0x211   : > { %s1405_s29 = smov %s1133_s9  ;;  %20 = sbr.rel (!%p18_p8) target bundleno = 8 (0x8), region = 116 }
 0x212   : > { %s1406_s30 = smov %s1397_s16 }
 0x213   : > { %s1407_s8 = smov %s1398_s1 }
 0x214   : > { %s1408_s9 = smov %s1399_s17 }
 0x218   :  { %686 = vsyncpa [#allocation3], 1 }
 0x219   :  { %688 = vsyncpa [#allocation3 + $0x1], 1 }

</bundles_post_ra>
